<compile_context>
chip_gen: v6e
topology: v6e:2x2x1
jax: 0.10.0
libtpu: 0.0.40
codegen_flags: <defaults>
</compile_context>

<pallas_src>
import functools

import jax
import jax.numpy as jnp
from jax.experimental import pallas as pl
from jax.experimental.pallas import tpu as pltpu

DROPOUT_P = 0.1


def _round_up(x, m):
    return (x + m - 1) // m * m


def _embedding_kernel(patch_ref, w_ref, pe_ref, rand_ref, out_ref, acc_ref):
    k = pl.program_id(1)

    @pl.when(k == 0)
    def _():
        acc_ref[...] = jnp.zeros_like(acc_ref)

    # MXU: bf16 operands, f32 accumulation.
    acc_ref[...] += jnp.dot(
        patch_ref[...], w_ref[...], preferred_element_type=jnp.float32
    )

    @pl.when(k == pl.num_programs(1) - 1)
    def _():
        # Epilogue: positional embedding (conv bias already folded in) + dropout.
        y = acc_ref[...] + pe_ref[...]
        keep = rand_ref[...] >= jnp.float32(DROPOUT_P)
        scale = jnp.float32(1.0 / (1.0 - DROPOUT_P))
        out_ref[...] = jnp.where(keep, y * scale, jnp.float32(0.0)).astype(
            out_ref.dtype
        )


@functools.partial(jax.jit, static_argnames=("patch_size",))
def embedding_forward(x, conv_w, conv_b, pe, dropout_key, *, patch_size):
    """x: (B, C, H, W) f32.  conv_w: (E, C, P, P).  conv_b: (E,).
    pe: (1, E, num_patches).  Returns (B, E, num_patches) f32."""
    B, C, H, W = x.shape
    P = patch_size
    Hp, Wp = H // P, W // P
    num_patches = Hp * Wp
    E = conv_w.shape[0]
    K = C * P * P
    M = B * num_patches

    # --- layout glue: non-overlapping patches, flattened in (C, kh, kw) order
    # to match the flattened Conv2d weight ordering.  Batch folded into M. ---
    patches = (
        x.reshape(B, C, Hp, P, Wp, P)
        .transpose(0, 2, 4, 1, 3, 5)          # (B, Hp, Wp, C, P, P)
        .reshape(M, K)
    )

    # --- tile sizes / TPU-friendly padding (lane-dense last dims) ---
    tile_m = min(256, _round_up(M, 16))
    M_pad = _round_up(M, tile_m)
    tile_k = min(512, _round_up(K, 128))
    K_pad = _round_up(K, tile_k)
    E_pad = _round_up(E, 128)

    patches_p = jnp.pad(
        patches.astype(jnp.bfloat16), ((0, M_pad - M), (0, K_pad - K))
    )
    w_mat = conv_w.reshape(E, K).T.astype(jnp.bfloat16)          # (K, E)
    w_p = jnp.pad(w_mat, ((0, K_pad - K), (0, E_pad - E)))

    # Fold the conv bias into the positional embedding, broadcast over batch.
    pe_fused = pe[0].T + conv_b[None, :]                         # (num_patches, E) f32
    pe_rep = jnp.broadcast_to(pe_fused[None], (B, num_patches, E)).reshape(M, E)
    pe_p = jnp.pad(pe_rep, ((0, M_pad - M), (0, E_pad - E)))

    # Uniform draws for dropout (see header: pltpu.prng_* has no interpret lowering).
    rand = jax.random.uniform(dropout_key, (M_pad, E_pad), dtype=jnp.float32)

    grid = (M_pad // tile_m, K_pad // tile_k)
    out_p = pl.pallas_call(
        _embedding_kernel,
        out_shape=jax.ShapeDtypeStruct((M_pad, E_pad), jnp.float32),
        grid=grid,
        in_specs=[
            pl.BlockSpec((tile_m, tile_k), lambda i, k: (i, k)),   # patches
            pl.BlockSpec((tile_k, E_pad), lambda i, k: (k, 0)),    # weights
            pl.BlockSpec((tile_m, E_pad), lambda i, k: (i, 0)),    # pe (+bias)
            pl.BlockSpec((tile_m, E_pad), lambda i, k: (i, 0)),    # dropout uniforms
        ],
        out_specs=pl.BlockSpec((tile_m, E_pad), lambda i, k: (i, 0)),
        scratch_shapes=[pltpu.VMEM((tile_m, E_pad), jnp.float32)],
        compiler_params=pltpu.CompilerParams(
            dimension_semantics=("parallel", "arbitrary"),
            vmem_limit_bytes=32 * 1024 * 1024,
        ),
    )(patches_p, w_p, pe_p, rand)

    # Strip padding and match PyTorch layout: Conv2d -> Flatten(2) gives
    # (B, emb_size, num_patches).  (Prefer fusing this into the consumer.)
    out = out_p[:M, :E].reshape(B, num_patches, E)
    return jnp.transpose(out, (0, 2, 1))


if __name__ == "__main__":
    # Small shapes consistent with the module's forward:
    #   img_size=(16, 16), patch_size=4, in_channels=4, emb_size=32, batch=2
    B, C, H, W = 2, 4, 16, 16
    P = 4
    E = 32
    num_patches = (H // P) * (W // P)

    key = jax.random.PRNGKey(0)
    kx, kw, kb, kpe, kdrop = jax.random.split(key, 5)

    x = jax.random.normal(kx, (B, C, H, W), dtype=jnp.float32)
    # Deterministic synthetic parameters (Conv2d weight/bias shapes).
    conv_w = jax.random.normal(kw, (E, C, P, P), dtype=jnp.float32) * 0.02
    conv_b = jax.random.normal(kb, (E,), dtype=jnp.float32) * 0.02
    # PyTorch forward draws pe ~ N(0, 0.02) each call; replicate deterministically.
    pe = jax.random.normal(kpe, (1, E, num_patches), dtype=jnp.float32) * 0.02

    out = embedding_forward(x, conv_w, conv_b, pe, kdrop, patch_size=P)
    out = jax.block_until_ready(out)

    assert out.shape == (B, E, num_patches), out.shape
    assert out.dtype == jnp.float32
    print("KERNEL_OK")
</pallas_src>

<mosaic_0001>
module attributes {stable_mosaic.version = 11 : i64} {
  func.func @_embedding_kernel(%arg0: i32, %arg1: i32, %arg2: memref<32x128xbf16, #tpu.memory_space<vmem>>, %arg3: memref<128x128xbf16, #tpu.memory_space<vmem>>, %arg4: memref<32x128xf32, #tpu.memory_space<vmem>>, %arg5: memref<32x128xf32, #tpu.memory_space<vmem>>, %arg6: memref<32x128xf32, #tpu.memory_space<vmem>>, %arg7: memref<32x128xf32, #tpu.memory_space<vmem>>) attributes {dimension_semantics = [#tpu.dimension_semantics<parallel>, #tpu.dimension_semantics<arbitrary>], iteration_bounds = array<i64: 1, 1>, scalar_prefetch = 0 : i64, scratch_operands = 1 : i64, tpu.core_type = #tpu.core_type<tc>, window_params = [{transform_indices = @transform_0, window_bounds = array<i64: 32, 128>}, {transform_indices = @transform_1, window_bounds = array<i64: 128, 128>}, {transform_indices = @transform_2, window_bounds = array<i64: 32, 128>}, {transform_indices = @transform_3, window_bounds = array<i64: 32, 128>}, {transform_indices = @transform_4, window_bounds = array<i64: 32, 128>}]} {
    %c0_i32 = arith.constant 0 : i32
    %0 = arith.cmpi eq, %arg1, %c0_i32 : i32
    %1 = arith.extui %0 : i1 to i32
    %c0_i32_0 = arith.constant 0 : i32
    %2 = arith.cmpi ne, %1, %c0_i32_0 : i32
    scf.if %2 {
      %cst_10 = arith.constant 0.000000e+00 : f32
      %12 = vector.broadcast %cst_10 : f32 to vector<32x128xf32>
      %c0_11 = arith.constant 0 : index
      %c0_12 = arith.constant 0 : index
      %13 = vector.load %arg7[%c0_11, %c0_12] : memref<32x128xf32, #tpu.memory_space<vmem>>, vector<32x128xf32>
      tpu.vector_store %arg7[%c0_11, %c0_12], %12 {strides = array<i32>} : memref<32x128xf32, #tpu.memory_space<vmem>>, vector<32x128xf32>,
    } else {
    }
    %c0 = arith.constant 0 : index
    %c0_1 = arith.constant 0 : index
    %3 = vector.load %arg7[%c0, %c0_1] : memref<32x128xf32, #tpu.memory_space<vmem>>, vector<32x128xf32>
    %c0_2 = arith.constant 0 : index
    %c0_3 = arith.constant 0 : index
    %4 = vector.load %arg2[%c0_2, %c0_3] : memref<32x128xbf16, #tpu.memory_space<vmem>>, vector<32x128xbf16>
    %c0_4 = arith.constant 0 : index
    %c0_5 = arith.constant 0 : index
    %5 = vector.load %arg3[%c0_4, %c0_5] : memref<128x128xbf16, #tpu.memory_space<vmem>>, vector<128x128xbf16>
    %cst = arith.constant dense<0.000000e+00> : vector<32x128xf32>
    %6 = tpu.matmul %4, %5, %cst {dimension_numbers = #tpu.dot_dimension_numbers<[1], [0], [0], [1], [0, 0, 1, 1], [], []>} : vector<32x128xbf16>, vector<128x128xbf16>, vector<32x128xf32> -> vector<32x128xf32>
    %7 = arith.addf %3, %6 : vector<32x128xf32>
    %c0_6 = arith.constant 0 : index
    %c0_7 = arith.constant 0 : index
    %8 = vector.load %arg7[%c0_6, %c0_7] : memref<32x128xf32, #tpu.memory_space<vmem>>, vector<32x128xf32>
    tpu.vector_store %arg7[%c0_6, %c0_7], %7 {strides = array<i32>} : memref<32x128xf32, #tpu.memory_space<vmem>>, vector<32x128xf32>,
    %c0_i32_8 = arith.constant 0 : i32
    %9 = arith.cmpi eq, %arg1, %c0_i32_8 : i32
    %10 = arith.extui %9 : i1 to i32
    %c0_i32_9 = arith.constant 0 : i32
    %11 = arith.cmpi ne, %10, %c0_i32_9 : i32
    scf.if %11 {
      %c0_10 = arith.constant 0 : index
      %c0_11 = arith.constant 0 : index
      %12 = vector.load %arg7[%c0_10, %c0_11] : memref<32x128xf32, #tpu.memory_space<vmem>>, vector<32x128xf32>
      %c0_12 = arith.constant 0 : index
      %c0_13 = arith.constant 0 : index
      %13 = vector.load %arg4[%c0_12, %c0_13] : memref<32x128xf32, #tpu.memory_space<vmem>>, vector<32x128xf32>
      %14 = arith.addf %12, %13 : vector<32x128xf32>
      %c0_14 = arith.constant 0 : index
      %c0_15 = arith.constant 0 : index
      %15 = vector.load %arg5[%c0_14, %c0_15] : memref<32x128xf32, #tpu.memory_space<vmem>>, vector<32x128xf32>
      %cst_16 = arith.constant 1.000000e-01 : f32
      %16 = vector.broadcast %cst_16 : f32 to vector<32x128xf32>
      %17 = arith.cmpf oge, %15, %16 : vector<32x128xf32>
      %cst_17 = arith.constant 1.11111116 : f32
      %18 = vector.broadcast %cst_17 : f32 to vector<32x128xf32>
      %19 = arith.mulf %14, %18 : vector<32x128xf32>
      %cst_18 = arith.constant 0.000000e+00 : f32
      %20 = vector.broadcast %cst_18 : f32 to vector<32x128xf32>
      %21 = arith.select %17, %19, %20 : vector<32x128xi1>, vector<32x128xf32>
      %c0_19 = arith.constant 0 : index
      %c0_20 = arith.constant 0 : index
      %22 = vector.load %arg6[%c0_19, %c0_20] : memref<32x128xf32, #tpu.memory_space<vmem>>, vector<32x128xf32>
      tpu.vector_store %arg6[%c0_19, %c0_20], %21 {strides = array<i32>} : memref<32x128xf32, #tpu.memory_space<vmem>>, vector<32x128xf32>,
    } else {
    }
    return
  }
  func.func @transform_0(%arg0: i32, %arg1: i32) -> (i32, i32) {
    %c0_i32 = arith.constant 0 : i32
    return %arg0, %arg1 : i32, i32
  }
  func.func @transform_1(%arg0: i32, %arg1: i32) -> (i32, i32) {
    %c0_i32 = arith.constant 0 : i32
    %c0_i32_0 = arith.constant 0 : i32
    return %arg1, %c0_i32 : i32, i32
  }
  func.func @transform_2(%arg0: i32, %arg1: i32) -> (i32, i32) {
    %c0_i32 = arith.constant 0 : i32
    %c0_i32_0 = arith.constant 0 : i32
    return %arg0, %c0_i32 : i32, i32
  }
  func.func @transform_3(%arg0: i32, %arg1: i32) -> (i32, i32) {
    %c0_i32 = arith.constant 0 : i32
    %c0_i32_0 = arith.constant 0 : i32
    return %arg0, %c0_i32 : i32, i32
  }
  func.func @transform_4(%arg0: i32, %arg1: i32) -> (i32, i32) {
    %c0_i32 = arith.constant 0 : i32
    %c0_i32_0 = arith.constant 0 : i32
    return %arg0, %c0_i32 : i32, i32
  }
}

</mosaic_0001>

<bundles_post_ra>
// kernel: embedding_forward.1
= control target key start
LH: loop header
LB: loop body
LE: loop exit
PB: predicated region body
PF: predicated region fallthrough
CT: control target
= control target key end

     0   :  { %s379_s0 = inlined_call_operand.vmem [shape: bf16[32,128], index: 0, kind: input, shape index: {}]   ;;  %s380_s1 = inlined_call_operand.vmem [shape: bf16[128,128], index: 1, kind: input, shape index: {}]   ;;  %s381_s2 = inlined_call_operand.vmem [shape: f32[32,128], index: 2, kind: input, shape index: {}]   ;;  %s382_s3 = inlined_call_operand.vmem [shape: f32[32,128], index: 3, kind: input, shape index: {}]   ;;  %s383_s4 = inlined_call_operand.hbm [shape: f32[32,128], index: 4, kind: output, shape index: {}]  }
   0x1   :  { %v262_v0 = vld [vmem:[%s380_s1 + $0x38] sm:$0xff]   ;;  %v263_v1 = vld [vmem:[%s380_s1 + $0x30] sm:$0xff]   ;;  %v264_v2 = vld [vmem:[%s380_s1 + $0x28] sm:$0xff]  }
   0x2   :  { %239 = vmatprep.subr.bf16.mxu0 %v262_v0  ;;  %v265_v3 = vld [vmem:[%s380_s1 + $0x20] sm:$0xff]  }
   0x3   :  { %240 = vmatpush3.bf16.msra.mxu0 %v262_v0  ;;  %v270_v4 = vld [vmem:[%s379_s0] sm:$0xff]  }
   0x4   :  { %241 = vmatprep.subr.bf16.mxu0 %v263_v1  ;;  %255 = vmatprep.mubr.bf16.mxu0 %v270_v4 }
   0x7   :  { %242 = vmatpush3.bf16.msra.mxu0 %v263_v1 }
   0x8   :  { %243 = vmatprep.subr.bf16.mxu0 %v264_v2 }
   0x9   :  { %9 = vsyncpa [#allocation4], 0  ;;  %v266_v5 = vld [vmem:[%s380_s1 + $0x18] sm:$0xff]   ;;  %v267_v6 = vld [vmem:[%s380_s1 + $0x10] sm:$0xff]   ;;  %s294_s23 = smov [#allocation3]  }
   0xa   :  { %v268_v7 = vld [vmem:[%s380_s1 + $0x8] sm:$0xff]   ;;  %v269_v8 = vld [vmem:[%s380_s1] sm:$0xff]   ;;  %v177_v10 = vld [vmem:[%s381_s2 + $0x10] sm:$0xff]  ;;  %s208_s24 = sshll.u32 %s294_s23, 4  ;;  %s209_s24 = int_to_ptr.vmem [resolvable:$true] %s208_s24 }
   0xb   :  { %244 = vmatpush3.bf16.msra.mxu0 %v264_v2  ;;  %v271_v9 = vld [vmem:[%s379_s0 + $0x8] sm:$0xff]   ;;  %v185_v11 = vld [vmem:[%s382_s3 + $0x10] sm:$0xff]  ;;  %v175_v13 = vld [vmem:[%s381_s2] sm:$0xff]  ;;  %p277_p1 = scmp.lt.s32.totalorder %s209_s24, %s209_s24 }
   0xc   :  { %245 = vmatprep.subr.bf16.mxu0 %v265_v3  ;;  %v183_v15 = vld [vmem:[%s382_s3] sm:$0xff]  ;;  %vm189_vm0 = vcmp.ge.f32.partialorder %v185_v11, 0.1  ;;  %v178_v17 = vld [vmem:[%s381_s2 + $0x18] sm:$0xff]  ;;  %v176_v22 = vld [vmem:[%s381_s2 + $0x8] sm:$0xff]  ;;  %s272_s2 = scalar_lea.vmem %s209_s24, 512 }
   0xd   :  { %v186_v20 = vld [vmem:[%s382_s3 + $0x18] sm:$0xff]  ;;  %vm187_vm1 = vcmp.ge.f32.partialorder %v183_v15, 0.1  ;;  %v184_v26 = vld [vmem:[%s382_s3 + $0x8] sm:$0xff]  ;;  %p273_p0 = scmp.ne.s32.totalorder %s209_s24, %s272_s2  ;;  %p278_p2 = scmp.lt.s32.totalorder %s272_s2, %s272_s2 }
   0xe   :  { %vm190_vm2 = vcmp.ge.f32.partialorder %v186_v20, 0.1  ;;  %vm188_vm3 = vcmp.ge.f32.partialorder %v184_v26, 0.1 }
   0xf   :  { %246 = vmatpush3.bf16.msra.mxu0 %v265_v3  ;;  %p279_p3 = por %p278_p2, %p277_p1 }
  0x10   :  { %247 = vmatprep.subr.bf16.mxu0 %v266_v5 }
  0x11   :  { %p280_p4 = pnand %p279_p3, %p273_p0 }
  0x13   :  { %248 = vmatpush3.bf16.msra.mxu0 %v266_v5 }
  0x14   :  { %249 = vmatprep.subr.bf16.mxu0 %v267_v6 }
  0x17   :  { %250 = vmatpush3.bf16.msra.mxu0 %v267_v6 }
  0x18   :  { %251 = vmatprep.subr.bf16.mxu0 %v268_v7 }
  0x1b   :  { %252 = vmatpush3.bf16.msra.mxu0 %v268_v7 }
  0x1c   :  { %253 = vmatprep.subr.bf16.mxu0 %v269_v8 }
  0x1f   :  { %254 = vmatpush3.bf16.msra.mxu0 %v269_v8 }
  0x22   :  { %256 = vmatmul.mubr.bf16.vlgmr.msra.gmra.mxu0 %v271_v9 }
  0xe2   :  { %v257_v12 = vpop.f32.mrf.mxu0 }
  0xe3   :  { %v181_v14 = vadd.f32 %v257_v12, %v177_v10 }
  0xe4   :  { %v145_v16 = vpop.f32.mrf.mxu0 }
  0xe5   :  { %v193_v18 = vmul.f32 1.1111112, %v181_v14  ;;  %v179_v19 = vadd.f32 %v175_v13, %v145_v16 }
  0xe6   :  { %v258_v21 = vpop.f32.mrf.mxu0 }
  0xe7   :  { %v197_v23 = vsel %vm189_vm0, %v193_v18, 0.0  ;;  %v191_v24 = vmul.f32 1.1111112, %v179_v19  ;;  %v182_v25 = vadd.f32 %v258_v21, %v178_v17 }
  0xe8   :  { %201 = vst [vmem:[#allocation3 + $0x10] sm:$0xff] %v197_v23  ;;  %v148_v27 = vpop.f32.mrf.mxu0 }
  0xe9   :  { %v195_v28 = vsel %vm187_vm1, %v191_v24, 0.0  ;;  %v194_v29 = vmul.f32 1.1111112, %v182_v25  ;;  %v180_v30 = vadd.f32 %v176_v22, %v148_v27 }
  0xea   :  { %199 = vst [vmem:[#allocation3] sm:$0xff] %v195_v28 }
  0xeb   :  { %v198_v31 = vsel %vm190_vm2, %v194_v29, 0.0  ;;  %v192_v32 = vmul.f32 1.1111112, %v180_v30 }
  0xec   :  { %202 = vst [vmem:[#allocation3 + $0x18] sm:$0xff] %v198_v31 }
  0xed   :  { %v196_v33 = vsel %vm188_vm3, %v192_v32, 0.0 }
  0xee   :  { %200 = vst [vmem:[#allocation3 + $0x8] sm:$0xff] %v196_v33 }
  0xef   :  { %283 = shalt.err (!%p280_p4)
}
  0xf0   :  { %s295_s3 = smov 128   ;;  %s296_s25 = smov 8  }
  0xf1   :  { %214 = dma.vmem_to_hbm [thread:$0]  %s209_s24, 512, %s383_s4, [#allocation4], %s295_s3, %s295_s3, %s296_s25  }
  0xf2   :  { %292 = dma.done.wait [#allocation4], 512  }
  0xf3   :  { %293 = vsyncadd [#allocation4], 4294966784 }
  0xf4   :  { %218 = vsyncpa [#allocation4], 1 }

</bundles_post_ra>
